<compile_context>
chip_gen: v5e
topology: v5e:2x2
jax: 0.10.0
libtpu: 0.0.40
codegen_flags: <defaults>
</compile_context>

<pallas_src>
import functools

import jax
import jax.numpy as jnp
import numpy as np
from jax.experimental import pallas as pl
from jax.experimental.pallas import tpu as pltpu

_LANE = 128


def _round_up(x, m):
    return ((x + m - 1) // m) * m


# --------------------------------------------------------------------------- #
# Fused kernel: attention weights + modal mixing + 0.9/0.1 residual blend.
# --------------------------------------------------------------------------- #
def _fused_kernel(*refs, modal_num):
    # refs = feat_0..feat_{M-1} : (RTc, HWp)    per-modal feature rows
    #        w1_ref             : (M, HWp, Hp)  first Linear, per-modal slices
    #        w2_ref             : (Hp, Mp)      second Linear (Mp = 128 lanes)
    #        out_ref            : (M, RTc, HWp)
    feat_refs = refs[:modal_num]
    w1_ref = refs[modal_num]
    w2_ref = refs[modal_num + 1]
    out_ref = refs[modal_num + 2]

    feats = [feat_refs[m][...] for m in range(modal_num)]

    # fc[0]: px @ W1 == sum_m feat_m @ W1[m]   (default MXU precision, f32 acc)
    a1 = jnp.dot(feats[0], w1_ref[0], preferred_element_type=jnp.float32)
    for m in range(1, modal_num):
        a1 = a1 + jnp.dot(feats[m], w1_ref[m], preferred_element_type=jnp.float32)
    a1 = jnp.maximum(a1, 0.0)                                         # ReLU
    a2 = jnp.dot(a1, w2_ref[...], preferred_element_type=jnp.float32)
    s = jax.nn.sigmoid(a2)                                            # values in (0,1)

    # Softmax over the first `modal_num` lanes. s is bounded in (0,1), so the
    # max-shift is unnecessary; the divide goes to the EUP via approx reciprocal.
    lane = jax.lax.broadcasted_iota(jnp.int32, s.shape, 1)
    e = jnp.where(lane < modal_num, jnp.exp(s), 0.0)
    denom = jnp.sum(e, axis=-1, keepdims=True)
    attn = e * pl.reciprocal(denom, approx=True)                      # (RTc, Mp)

    # out_m = 0.9 * feat_m + 0.1 * sum_k feat_k * attn[:, k]
    mixed = feats[0] * attn[:, 0:1]
    for m in range(1, modal_num):
        mixed = mixed + feats[m] * attn[:, m:m + 1]
    for m in range(modal_num):
        out_ref[m] = 0.9 * feats[m] + 0.1 * mixed


# --------------------------------------------------------------------------- #
# Tiling / VMEM planning (generation-agnostic, conservative budget)
# --------------------------------------------------------------------------- #
def _plan_tiles(B, C, HW, hidden, modal_num):
    HWp = _round_up(HW, _LANE)
    Hp = _round_up(hidden, _LANE)
    Mp = _LANE
    bf = 4  # f32 bytes

    # Per channel-row VMEM at one grid step: M input blocks + the (M,...) output
    # block, each double-buffered by the pipeline.
    row_bytes = 2 * (modal_num * HWp + modal_num * HWp) * bf
    # Resident weights: constant index_map (copied once) but allocated x2.
    weight_bytes = 2 * (modal_num * HWp * Hp + Hp * Mp) * bf

    budget = 40 * 1024 * 1024                     # safe on v5e/v6e (128 MiB) & v7x (64 MiB)
    avail = max(budget - weight_bytes, 4 * 1024 * 1024)
    max_rows = max(int(avail // row_bytes), 8)

    if C <= max_rows:
        rtc, Cp = C, C                            # block == full channel dim (no padding)
    else:
        rtc = max((max_rows // 8) * 8, 8)
        Cp = _round_up(C, rtc)

    # Keep >= 2 "parallel" grid steps so both v7x TensorCores get work (cheap case only).
    if B * (Cp // rtc) < 2 and C % 16 == 0:
        rtc = C // 2

    vmem_limit = weight_bytes + rtc * row_bytes + rtc * (Hp + Mp) * bf * 4
    vmem_limit = int(min(max(vmem_limit * 5 // 4, 32 * 1024 * 1024), 64 * 1024 * 1024))
    return HWp, Hp, Mp, rtc, Cp, vmem_limit


# --------------------------------------------------------------------------- #
# Wrapper
# --------------------------------------------------------------------------- #
def multimodal_attention_forward(feature_list, w1, w2):
    """feature_list: list of modal_num arrays (B, C, H, W) (NCHW, like PyTorch).
    w1: (M*H*W, hidden)  == fc[0].weight.T
    w2: (hidden, M)      == fc[2].weight.T
    returns: (B, M*C, H, W)
    """
    modal_num = len(feature_list)
    B, C, H, W = feature_list[0].shape
    HW = H * W
    K = modal_num * HW
    hidden = w1.shape[1]
    assert w1.shape == (K, hidden) and w2.shape == (hidden, modal_num)
    assert modal_num <= _LANE

    f32 = jnp.float32
    HWp, Hp, Mp, RTc, Cp, vmem_limit = _plan_tiles(B, C, HW, hidden, modal_num)
    n_ctiles = Cp // RTc

    # ---- weights: (M*HW, hidden) -> (M, HWp, Hp), zero padded (small, one-time) ---
    w1p = jnp.zeros((modal_num, HWp, Hp), f32)
    w1p = w1p.at[:, :HW, :hidden].set(w1.astype(f32).reshape(modal_num, HW, hidden))
    w2p = jnp.zeros((Hp, Mp), f32).at[:hidden, :modal_num].set(w2.astype(f32))

    # ---- features: free (B,C,H,W)->(B,C,HW) views; pad only if layout demands ----
    feats = []
    for f in feature_list:
        fr = f.astype(f32).reshape(B, C, HW)
        if HWp != HW:
            fr = jnp.pad(fr, ((0, 0), (0, 0), (0, HWp - HW)))
        if Cp != C:
            fr = jnp.pad(fr, ((0, 0), (0, Cp - C), (0, 0)))
        feats.append(fr)

    feat_spec = pl.BlockSpec((None, RTc, HWp), lambda b, j: (b, j, 0))
    in_specs = ([feat_spec] * modal_num
                + [pl.BlockSpec((modal_num, HWp, Hp), lambda b, j: (0, 0, 0)),
                   pl.BlockSpec((Hp, Mp), lambda b, j: (0, 0))])
    out_specs = pl.BlockSpec((None, modal_num, RTc, HWp), lambda b, j: (b, 0, j, 0))

    out = pl.pallas_call(
        functools.partial(_fused_kernel, modal_num=modal_num),
        out_shape=jax.ShapeDtypeStruct((B, modal_num, Cp, HWp), f32),
        grid_spec=pltpu.PrefetchScalarGridSpec(
            num_scalar_prefetch=0,
            grid=(B, n_ctiles),
            in_specs=in_specs,
            out_specs=out_specs,
        ),
        compiler_params=pltpu.CompilerParams(
            dimension_semantics=("parallel", "parallel"),
            vmem_limit_bytes=vmem_limit),
    )(*feats, w1p, w2p)

    # (B, M, Cp, HWp) -> (B, M*C, H, W); a free view when no padding was added.
    out = out[:, :, :C, :HW]
    return out.reshape(B, modal_num * C, H, W)


# --------------------------------------------------------------------------- #
# Pure-JAX reference (mirror of the PyTorch forward)
# --------------------------------------------------------------------------- #
def _reference(feature_list, w1, w2):
    modal_num = len(feature_list)
    B, C, H, W = feature_list[0].shape
    feats = [f.astype(jnp.float32).reshape(B, C, H * W) for f in feature_list]
    px = jnp.concatenate(feats, axis=-1)                               # (B, C, M*HW)
    a1 = jnp.maximum(jnp.dot(px, w1.astype(jnp.float32)), 0.0)
    a2 = jax.nn.sigmoid(jnp.dot(a1, w2.astype(jnp.float32)))
    attn = jax.nn.softmax(a2, axis=2)                                  # (B, C, M)
    attn_t = jnp.transpose(attn, (0, 2, 1))                            # (B, M, C)
    x = jnp.stack(feature_list, axis=1).astype(jnp.float32)            # (B, M, C, H, W)
    mixed = jnp.sum(x * attn_t[:, :, :, None, None], axis=1)           # (B, C, H, W)
    updated = x * 0.9 + mixed[:, None] * 0.1                           # (B, M, C, H, W)
    return updated.reshape(B, modal_num * C, H, W)


if __name__ == "__main__":
    key = jax.random.PRNGKey(0)
    modal_num, B, C, H, W = 3, 2, 4, 16, 16
    reduction = 16
    HW = H * W
    K = modal_num * HW              # 768  (== input_size**2 * modal_num)
    hidden = K // reduction         # 48

    keys = jax.random.split(key, modal_num + 2)
    feature_list = [jax.random.normal(keys[i], (B, C, H, W), jnp.float32)
                    for i in range(modal_num)]
    w1 = jax.random.normal(keys[modal_num], (K, hidden), jnp.float32) / np.sqrt(K)
    w2 = jax.random.normal(keys[modal_num + 1], (hidden, modal_num),
                           jnp.float32) / np.sqrt(hidden)

    out = jax.jit(multimodal_attention_forward)(feature_list, w1, w2)
    out = jax.block_until_ready(out)

    ref = _reference(feature_list, w1, w2)
    err = float(jnp.max(jnp.abs(out - ref)))
    assert out.shape == (B, modal_num * C, H, W), out.shape
    # 5e-3 headroom: kernel matmuls run at default (single-pass bf16) MXU precision
    # per the perf review; genuine indexing/weighting bugs show up at O(0.1).
    assert err < 5e-3, f"max abs err {err}"
    print("KERNEL_OK")
</pallas_src>

<mosaic_0001>
module attributes {stable_mosaic.version = 11 : i64} {
  func.func @_fused_kernel(%arg0: i32, %arg1: i32, %arg2: memref<1x4x256xf32, #tpu.memory_space<vmem>>, %arg3: memref<1x4x256xf32, #tpu.memory_space<vmem>>, %arg4: memref<1x4x256xf32, #tpu.memory_space<vmem>>, %arg5: memref<3x256x128xf32, #tpu.memory_space<vmem>>, %arg6: memref<128x128xf32, #tpu.memory_space<vmem>>, %arg7: memref<1x3x4x256xf32, #tpu.memory_space<vmem>>) attributes {dimension_semantics = [#tpu.dimension_semantics<parallel>, #tpu.dimension_semantics<parallel>], iteration_bounds = array<i64: 2, 1>, scalar_prefetch = 0 : i64, scratch_operands = 0 : i64, tpu.core_type = #tpu.core_type<tc>, window_params = [{transform_indices = @transform_0, window_bounds = array<i64: 1, 4, 256>}, {transform_indices = @transform_1, window_bounds = array<i64: 1, 4, 256>}, {transform_indices = @transform_2, window_bounds = array<i64: 1, 4, 256>}, {pipeline_mode = #tpu.pipeline_mode<synchronous>, transform_indices = @transform_3, window_bounds = array<i64: 3, 256, 128>}, {pipeline_mode = #tpu.pipeline_mode<synchronous>, transform_indices = @transform_4, window_bounds = array<i64: 128, 128>}, {transform_indices = @transform_5, window_bounds = array<i64: 1, 3, 4, 256>}]} {
    %c0 = arith.constant 0 : index
    %c0_0 = arith.constant 0 : index
    %c0_1 = arith.constant 0 : index
    %0 = vector.load %arg2[%c0, %c0_0, %c0_1] : memref<1x4x256xf32, #tpu.memory_space<vmem>>, vector<1x4x256xf32>
    %1 = vector.shape_cast %0 : vector<1x4x256xf32> to vector<4x256xf32>
    %c0_2 = arith.constant 0 : index
    %c0_3 = arith.constant 0 : index
    %c0_4 = arith.constant 0 : index
    %2 = vector.load %arg3[%c0_2, %c0_3, %c0_4] : memref<1x4x256xf32, #tpu.memory_space<vmem>>, vector<1x4x256xf32>
    %3 = vector.shape_cast %2 : vector<1x4x256xf32> to vector<4x256xf32>
    %c0_5 = arith.constant 0 : index
    %c0_6 = arith.constant 0 : index
    %c0_7 = arith.constant 0 : index
    %4 = vector.load %arg4[%c0_5, %c0_6, %c0_7] : memref<1x4x256xf32, #tpu.memory_space<vmem>>, vector<1x4x256xf32>
    %5 = vector.shape_cast %4 : vector<1x4x256xf32> to vector<4x256xf32>
    %c0_8 = arith.constant 0 : index
    %c0_9 = arith.constant 0 : index
    %c0_10 = arith.constant 0 : index
    %6 = vector.load %arg5[%c0_8, %c0_9, %c0_10] : memref<3x256x128xf32, #tpu.memory_space<vmem>>, vector<1x256x128xf32>
    %7 = vector.shape_cast %6 : vector<1x256x128xf32> to vector<256x128xf32>
    %cst = arith.constant dense<0.000000e+00> : vector<4x128xf32>
    %8 = tpu.matmul %1, %7, %cst {dimension_numbers = #tpu.dot_dimension_numbers<[1], [0], [0], [1], [0, 0, 1, 1], [], []>} : vector<4x256xf32>, vector<256x128xf32>, vector<4x128xf32> -> vector<4x128xf32>
    %c1 = arith.constant 1 : index
    %c0_11 = arith.constant 0 : index
    %c0_12 = arith.constant 0 : index
    %9 = vector.load %arg5[%c1, %c0_11, %c0_12] : memref<3x256x128xf32, #tpu.memory_space<vmem>>, vector<1x256x128xf32>
    %10 = vector.shape_cast %9 : vector<1x256x128xf32> to vector<256x128xf32>
    %cst_13 = arith.constant dense<0.000000e+00> : vector<4x128xf32>
    %11 = tpu.matmul %3, %10, %cst_13 {dimension_numbers = #tpu.dot_dimension_numbers<[1], [0], [0], [1], [0, 0, 1, 1], [], []>} : vector<4x256xf32>, vector<256x128xf32>, vector<4x128xf32> -> vector<4x128xf32>
    %12 = arith.addf %8, %11 : vector<4x128xf32>
    %c2 = arith.constant 2 : index
    %c0_14 = arith.constant 0 : index
    %c0_15 = arith.constant 0 : index
    %13 = vector.load %arg5[%c2, %c0_14, %c0_15] : memref<3x256x128xf32, #tpu.memory_space<vmem>>, vector<1x256x128xf32>
    %14 = vector.shape_cast %13 : vector<1x256x128xf32> to vector<256x128xf32>
    %cst_16 = arith.constant dense<0.000000e+00> : vector<4x128xf32>
    %15 = tpu.matmul %5, %14, %cst_16 {dimension_numbers = #tpu.dot_dimension_numbers<[1], [0], [0], [1], [0, 0, 1, 1], [], []>} : vector<4x256xf32>, vector<256x128xf32>, vector<4x128xf32> -> vector<4x128xf32>
    %16 = arith.addf %12, %15 : vector<4x128xf32>
    %cst_17 = arith.constant 0.000000e+00 : f32
    %17 = vector.broadcast %cst_17 : f32 to vector<4x128xf32>
    %18 = arith.maximumf %16, %17 : vector<4x128xf32>
    %c0_18 = arith.constant 0 : index
    %c0_19 = arith.constant 0 : index
    %19 = vector.load %arg6[%c0_18, %c0_19] : memref<128x128xf32, #tpu.memory_space<vmem>>, vector<128x128xf32>
    %cst_20 = arith.constant dense<0.000000e+00> : vector<4x128xf32>
    %20 = tpu.matmul %18, %19, %cst_20 {dimension_numbers = #tpu.dot_dimension_numbers<[1], [0], [0], [1], [0, 0, 1, 1], [], []>} : vector<4x128xf32>, vector<128x128xf32>, vector<4x128xf32> -> vector<4x128xf32>
    %21 = arith.negf %20 : vector<4x128xf32>
    %22 = math.exp %21 : vector<4x128xf32>
    %cst_21 = arith.constant 1.000000e+00 : f32
    %23 = vector.broadcast %cst_21 : f32 to vector<4x128xf32>
    %24 = arith.addf %23, %22 : vector<4x128xf32>
    %25 = arith.divf %23, %24 : vector<4x128xf32>
    %26 = tpu.iota {dimensions = array<i32: 1>} : vector<4x128xi32>
    %c3_i32 = arith.constant 3 : i32
    %27 = vector.broadcast %c3_i32 : i32 to vector<4x128xi32>
    %28 = arith.cmpi slt, %26, %27 : vector<4x128xi32>
    %29 = math.exp %25 : vector<4x128xf32>
    %cst_22 = arith.constant 0.000000e+00 : f32
    %30 = vector.broadcast %cst_22 : f32 to vector<4x128xf32>
    %31 = arith.select %28, %29, %30 : vector<4x128xi1>, vector<4x128xf32>
    %cst_23 = arith.constant dense<0.000000e+00> : vector<4xf32>
    %32 = vector.multi_reduction <add>, %31, %cst_23 [1] : vector<4x128xf32> to vector<4xf32>
    %33 = vector.shape_cast %32 : vector<4xf32> to vector<4x1xf32>
    %34 = tpu.reciprocal %33 {approx = true} : vector<4x1xf32> -> vector<4x1xf32>
    %35 = vector.broadcast %34 : vector<4x1xf32> to vector<4x128xf32>
    %36 = arith.mulf %31, %35 : vector<4x128xf32>
    %37 = vector.extract_strided_slice %36 {offsets = [0, 0], sizes = [4, 1], strides = [1, 1]} : vector<4x128xf32> to vector<4x1xf32>
    %38 = vector.broadcast %37 : vector<4x1xf32> to vector<4x256xf32>
    %39 = arith.mulf %1, %38 : vector<4x256xf32>
    %40 = vector.extract_strided_slice %36 {offsets = [0, 1], sizes = [4, 1], strides = [1, 1]} : vector<4x128xf32> to vector<4x1xf32>
    %41 = vector.broadcast %40 : vector<4x1xf32> to vector<4x256xf32>
    %42 = arith.mulf %3, %41 : vector<4x256xf32>
    %43 = arith.addf %39, %42 : vector<4x256xf32>
    %44 = vector.extract_strided_slice %36 {offsets = [0, 2], sizes = [4, 1], strides = [1, 1]} : vector<4x128xf32> to vector<4x1xf32>
    %45 = vector.broadcast %44 : vector<4x1xf32> to vector<4x256xf32>
    %46 = arith.mulf %5, %45 : vector<4x256xf32>
    %47 = arith.addf %43, %46 : vector<4x256xf32>
    %cst_24 = arith.constant 0.899999976 : f32
    %48 = vector.broadcast %cst_24 : f32 to vector<4x256xf32>
    %49 = arith.mulf %48, %1 : vector<4x256xf32>
    %cst_25 = arith.constant 1.000000e-01 : f32
    %50 = vector.broadcast %cst_25 : f32 to vector<4x256xf32>
    %51 = arith.mulf %50, %47 : vector<4x256xf32>
    %52 = arith.addf %49, %51 : vector<4x256xf32>
    %c0_26 = arith.constant 0 : index
    %c0_27 = arith.constant 0 : index
    %c0_28 = arith.constant 0 : index
    %c0_29 = arith.constant 0 : index
    %53 = vector.load %arg7[%c0_26, %c0_27, %c0_28, %c0_29] : memref<1x3x4x256xf32, #tpu.memory_space<vmem>>, vector<1x1x4x256xf32>
    %54 = vector.shape_cast %53 : vector<1x1x4x256xf32> to vector<4x256xf32>
    %55 = vector.shape_cast %52 : vector<4x256xf32> to vector<1x1x4x256xf32>
    tpu.vector_store %arg7[%c0_26, %c0_27, %c0_28, %c0_29], %55 {strides = array<i32>} : memref<1x3x4x256xf32, #tpu.memory_space<vmem>>, vector<1x1x4x256xf32>,
    %cst_30 = arith.constant 0.899999976 : f32
    %56 = vector.broadcast %cst_30 : f32 to vector<4x256xf32>
    %57 = arith.mulf %56, %3 : vector<4x256xf32>
    %cst_31 = arith.constant 1.000000e-01 : f32
    %58 = vector.broadcast %cst_31 : f32 to vector<4x256xf32>
    %59 = arith.mulf %58, %47 : vector<4x256xf32>
    %60 = arith.addf %57, %59 : vector<4x256xf32>
    %c0_32 = arith.constant 0 : index
    %c1_33 = arith.constant 1 : index
    %c0_34 = arith.constant 0 : index
    %c0_35 = arith.constant 0 : index
    %61 = vector.load %arg7[%c0_32, %c1_33, %c0_34, %c0_35] : memref<1x3x4x256xf32, #tpu.memory_space<vmem>>, vector<1x1x4x256xf32>
    %62 = vector.shape_cast %61 : vector<1x1x4x256xf32> to vector<4x256xf32>
    %63 = vector.shape_cast %60 : vector<4x256xf32> to vector<1x1x4x256xf32>
    tpu.vector_store %arg7[%c0_32, %c1_33, %c0_34, %c0_35], %63 {strides = array<i32>} : memref<1x3x4x256xf32, #tpu.memory_space<vmem>>, vector<1x1x4x256xf32>,
    %cst_36 = arith.constant 0.899999976 : f32
    %64 = vector.broadcast %cst_36 : f32 to vector<4x256xf32>
    %65 = arith.mulf %64, %5 : vector<4x256xf32>
    %cst_37 = arith.constant 1.000000e-01 : f32
    %66 = vector.broadcast %cst_37 : f32 to vector<4x256xf32>
    %67 = arith.mulf %66, %47 : vector<4x256xf32>
    %68 = arith.addf %65, %67 : vector<4x256xf32>
    %c0_38 = arith.constant 0 : index
    %c2_39 = arith.constant 2 : index
    %c0_40 = arith.constant 0 : index
    %c0_41 = arith.constant 0 : index
    %69 = vector.load %arg7[%c0_38, %c2_39, %c0_40, %c0_41] : memref<1x3x4x256xf32, #tpu.memory_space<vmem>>, vector<1x1x4x256xf32>
    %70 = vector.shape_cast %69 : vector<1x1x4x256xf32> to vector<4x256xf32>
    %71 = vector.shape_cast %68 : vector<4x256xf32> to vector<1x1x4x256xf32>
    tpu.vector_store %arg7[%c0_38, %c2_39, %c0_40, %c0_41], %71 {strides = array<i32>} : memref<1x3x4x256xf32, #tpu.memory_space<vmem>>, vector<1x1x4x256xf32>,
    return
  }
  func.func @transform_0(%arg0: i32, %arg1: i32) -> (i32, i32, i32) {
    %c0_i32 = arith.constant 0 : i32
    %c0_i32_0 = arith.constant 0 : i32
    return %arg0, %arg1, %c0_i32 : i32, i32, i32
  }
  func.func @transform_1(%arg0: i32, %arg1: i32) -> (i32, i32, i32) {
    %c0_i32 = arith.constant 0 : i32
    %c0_i32_0 = arith.constant 0 : i32
    return %arg0, %arg1, %c0_i32 : i32, i32, i32
  }
  func.func @transform_2(%arg0: i32, %arg1: i32) -> (i32, i32, i32) {
    %c0_i32 = arith.constant 0 : i32
    %c0_i32_0 = arith.constant 0 : i32
    return %arg0, %arg1, %c0_i32 : i32, i32, i32
  }
  func.func @transform_3(%arg0: i32, %arg1: i32) -> (i32, i32, i32) {
    %c0_i32 = arith.constant 0 : i32
    %c0_i32_0 = arith.constant 0 : i32
    %c0_i32_1 = arith.constant 0 : i32
    %c0_i32_2 = arith.constant 0 : i32
    return %c0_i32, %c0_i32_0, %c0_i32_1 : i32, i32, i32
  }
  func.func @transform_4(%arg0: i32, %arg1: i32) -> (i32, i32) {
    %c0_i32 = arith.constant 0 : i32
    %c0_i32_0 = arith.constant 0 : i32
    %c0_i32_1 = arith.constant 0 : i32
    return %c0_i32, %c0_i32_0 : i32, i32
  }
  func.func @transform_5(%arg0: i32, %arg1: i32) -> (i32, i32, i32, i32) {
    %c0_i32 = arith.constant 0 : i32
    %c0_i32_0 = arith.constant 0 : i32
    %c0_i32_1 = arith.constant 0 : i32
    return %arg0, %c0_i32, %arg1, %c0_i32_0 : i32, i32, i32, i32
  }
}

</mosaic_0001>

<bundles_post_ra>
// kernel: multimodal_attention_forward.1
= control target key start
LH: loop header
LB: loop body
LE: loop exit
PB: predicated region body
PF: predicated region fallthrough
CT: control target
= control target key end

     0   :  { %s996_s18 = smov 0   ;;  %s998_s19 = smov 0   ;;  %s1401_s0 = inlined_call_operand.vmem [shape: f32[2,4,256], index: 0, kind: input, shape index: {}]   ;;  %s1402_s1 = inlined_call_operand.vmem [shape: f32[2,4,256], index: 1, kind: input, shape index: {}]   ;;  %s1403_s2 = inlined_call_operand.vmem [shape: f32[2,4,256], index: 2, kind: input, shape index: {}]   ;;  %s1404_s3 = inlined_call_operand.vmem [shape: f32[3,256,128], index: 3, kind: input, shape index: {}]   ;;  %s1405_s4 = inlined_call_operand.vmem [shape: f32[128,128], index: 4, kind: input, shape index: {}]   ;;  %s1406_s5 = inlined_call_operand.vmem [shape: f32[2,3,4,256], index: 5, kind: output, shape index: {}]  }
   0x1   :  { %s1000_s20 = smov 0  }
   0x2 LB: > { %s27_s21 = sadd.s32 1, %s956_s19  ;;  %p817_p0 = scmp.ge.s32.totalorder %s960_s20, 1  ;;  %s960_s20 = sphi %s1000_s20, %s15_s20   ;;  %s956_s19 = sphi %s998_s19, %s1408_s19   ;;  %s952_s18 = sphi %s996_s18, %s1407_s18  }
   0x3   : > { %p29_p1 = scmp.ge.s32.totalorder %s27_s21, 2  ;;  %p239_p2 = scmp.lt.s32.totalorder %s960_s20, 3 }
   0x5   : > { %s1410_s21 = smov (%p29_p1, %s27_s21), 0  ;;  %p240_p3 = pnand %p817_p0, %p239_p2 }
   0x6   : > { %p293_p4 = scmp.lt.s32.totalorder (!%p240_p3), %s952_s18, 1 }
   0x7   : > { %243 = sbr.rel (%p240_p3) target bundleno = 642 (0x282), region = 40 }
   0xc   : > { %v840_v0 = vld [vmem:[%s1404_s3 + $0x178] sm:$0xff]  ;;  %v839_v2 = vld [vmem:[%s1404_s3 + $0x170] sm:$0xff]  ;;  %v838_v4 = vld [vmem:[%s1404_s3 + $0x168] sm:$0xff]  ;;  %s1412_s18 = smov (!%p293_p4, %s952_s18), 1  ;;  %vm631_vm5 = vcmask 1043456  }
   0xd   : > { %v856_v1 = vld [vmem:[%s1404_s3 + $0x1f8] sm:$0xff]  ;;  %403 = vmatpush.msra.mxu0 %v840_v0  ;;  %v855_v3 = vld [vmem:[%s1404_s3 + $0x1f0] sm:$0xff]  ;;  %v854_v5 = vld [vmem:[%s1404_s3 + $0x1e8] sm:$0xff]  ;;  %s1152_s24 = sshll.u32 %s1412_s18, 3  ;;  %s897_s28 = smul.u32 24, %s1412_s18 }
   0xe   : > { %423 = vmatpush.msra.mxu1 %v856_v1  ;;  %v837_v6 = vld [vmem:[%s1404_s3 + $0x160] sm:$0xff]  ;;  %v836_v8 = vld [vmem:[%s1404_s3 + $0x158] sm:$0xff]  ;;  %v346_v11 = vld [vmem:[%s1404_s3 + $0x70] sm:$0xff]  ;;  %s310_s14 = scalar_lea.vmem %s1402_s1, %s1152_s24  ;;  %s301_s26 = scalar_lea.vmem %s1401_s0, %s1152_s24 }
   0xf   : > { %404 = vmatpush.msra.mxu0 %v839_v2  ;;  %v853_v7 = vld [vmem:[%s1404_s3 + $0x1e0] sm:$0xff]  ;;  %v852_v9 = vld [vmem:[%s1404_s3 + $0x1d8] sm:$0xff]  ;;  %v835_v12 = vld [vmem:[%s1404_s3 + $0x150] sm:$0xff]  ;;  %s328_s6 = scalar_lea.vmem %s1406_s5, %s897_s28 }
  0x10   : > { %424 = vmatpush.msra.mxu1 %v855_v3  ;;  %v347_v10 = vld [vmem:[%s1404_s3 + $0x78] sm:$0xff]  ;;  %v851_v13 = vld [vmem:[%s1404_s3 + $0x1d0] sm:$0xff]  ;;  %v345_v15 = vld [vmem:[%s1404_s3 + $0x68] sm:$0xff] }
  0x11   : > { %405 = vmatpush.msra.mxu0 %v838_v4  ;;  %449 = vmatpush.msra.mxu2 %v347_v10  ;;  %v363_v14 = vld [vmem:[%s1404_s3 + $0xf8] sm:$0xff]  ;;  %v362_v16 = vld [vmem:[%s1404_s3 + $0xf0] sm:$0xff]  ;;  %v834_v17 = vld [vmem:[%s1404_s3 + $0x148] sm:$0xff] }
  0x12   : > { %425 = vmatpush.msra.mxu1 %v854_v5  ;;  %v850_v18 = vld [vmem:[%s1404_s3 + $0x1c8] sm:$0xff]  ;;  %469 = vmatpush.msra.mxu3 %v363_v14  ;;  %v344_v19 = vld [vmem:[%s1404_s3 + $0x60] sm:$0xff]  ;;  %v343_v23 = vld [vmem:[%s1404_s3 + $0x58] sm:$0xff] }
  0x13   : > { %406 = vmatpush.msra.mxu0 %v837_v6  ;;  %450 = vmatpush.msra.mxu2 %v346_v11  ;;  %v361_v20 = vld [vmem:[%s1404_s3 + $0xe8] sm:$0xff]  ;;  %v833_v21 = vld [vmem:[%s1404_s3 + $0x140] sm:$0xff]  ;;  %v832_v25 = vld [vmem:[%s1404_s3 + $0x138] sm:$0xff] }
  0x14   : > { %426 = vmatpush.msra.mxu1 %v853_v7  ;;  %v849_v22 = vld [vmem:[%s1404_s3 + $0x1c0] sm:$0xff]  ;;  %470 = vmatpush.msra.mxu3 %v362_v16  ;;  %v848_v26 = vld [vmem:[%s1404_s3 + $0x1b8] sm:$0xff]  ;;  %v342_v27 = vld [vmem:[%s1404_s3 + $0x50] sm:$0xff] }
  0x15   : > { %407 = vmatpush.msra.mxu0 %v836_v8  ;;  %451 = vmatpush.msra.mxu2 %v345_v15  ;;  %v360_v24 = vld [vmem:[%s1404_s3 + $0xe0] sm:$0xff]  ;;  %v359_v28 = vld [vmem:[%s1404_s3 + $0xd8] sm:$0xff]  ;;  %v831_v29 = vld [vmem:[%s1404_s3 + $0x130] sm:$0xff] }
  0x16   : > { %427 = vmatpush.msra.mxu1 %v852_v9  ;;  %471 = vmatpush.msra.mxu3 %v361_v20  ;;  %v847_v30 = vld [vmem:[%s1404_s3 + $0x1b0] sm:$0xff]  ;;  %v341_v31 = vld [vmem:[%s1404_s3 + $0x48] sm:$0xff]  ;;  %v340_v35 = vld [vmem:[%s1404_s3 + $0x40] sm:$0xff] }
  0x17   : > { %408 = vmatpush.msra.mxu0 %v835_v12  ;;  %452 = vmatpush.msra.mxu2 %v344_v19  ;;  %v358_v32 = vld [vmem:[%s1404_s3 + $0xd0] sm:$0xff]  ;;  %v830_v33 = vld [vmem:[%s1404_s3 + $0x128] sm:$0xff]  ;;  %v829_v37 = vld [vmem:[%s1404_s3 + $0x120] sm:$0xff] }
  0x18   : > { %428 = vmatpush.msra.mxu1 %v851_v13  ;;  %472 = vmatpush.msra.mxu3 %v360_v24  ;;  %v846_v34 = vld [vmem:[%s1404_s3 + $0x1a8] sm:$0xff]  ;;  %v845_v38 = vld [vmem:[%s1404_s3 + $0x1a0] sm:$0xff]  ;;  %v339_v39 = vld [vmem:[%s1404_s3 + $0x38] sm:$0xff] }
  0x19   : > { %409 = vmatpush.msra.mxu0 %v834_v17  ;;  %453 = vmatpush.msra.mxu2 %v343_v23  ;;  %v357_v36 = vld [vmem:[%s1404_s3 + $0xc8] sm:$0xff]  ;;  %v356_v40 = vld [vmem:[%s1404_s3 + $0xc0] sm:$0xff]  ;;  %v828_v41 = vld [vmem:[%s1404_s3 + $0x118] sm:$0xff] }
  0x1a   : > { %429 = vmatpush.msra.mxu1 %v850_v18  ;;  %473 = vmatpush.msra.mxu3 %v359_v28  ;;  %v844_v42 = vld [vmem:[%s1404_s3 + $0x198] sm:$0xff]  ;;  %v338_v43 = vld [vmem:[%s1404_s3 + $0x30] sm:$0xff]  ;;  %v337_v47 = vld [vmem:[%s1404_s3 + $0x28] sm:$0xff] }
  0x1b   : > { %410 = vmatpush.msra.mxu0 %v833_v21  ;;  %454 = vmatpush.msra.mxu2 %v342_v27  ;;  %v355_v44 = vld [vmem:[%s1404_s3 + $0xb8] sm:$0xff]  ;;  %v827_v45 = vld [vmem:[%s1404_s3 + $0x110] sm:$0xff]  ;;  %v826_v49 = vld [vmem:[%s1404_s3 + $0x108] sm:$0xff] }
  0x1c   : > { %430 = vmatpush.msra.mxu1 %v849_v22  ;;  %474 = vmatpush.msra.mxu3 %v358_v32  ;;  %v843_v46 = vld [vmem:[%s1404_s3 + $0x190] sm:$0xff]  ;;  %v842_v50 = vld [vmem:[%s1404_s3 + $0x188] sm:$0xff]  ;;  %v336_v51 = vld [vmem:[%s1404_s3 + $0x20] sm:$0xff] }
  0x1d   : > { %411 = vmatpush.msra.mxu0 %v832_v25  ;;  %455 = vmatpush.msra.mxu2 %v341_v31  ;;  %v354_v48 = vld [vmem:[%s1404_s3 + $0xb0] sm:$0xff]  ;;  %v353_v52 = vld [vmem:[%s1404_s3 + $0xa8] sm:$0xff]  ;;  %v825_v53 = vld [vmem:[%s1404_s3 + $0x100] sm:$0xff] }
  0x1e   : > { %431 = vmatpush.msra.mxu1 %v848_v26  ;;  %475 = vmatpush.msra.mxu3 %v357_v36  ;;  %v841_v54 = vld [vmem:[%s1404_s3 + $0x180] sm:$0xff]  ;;  %v872_v56 = vld [vmem:[%s1404_s3 + $0x278] sm:$0xff]  ;;  %v871_v60 = vld [vmem:[%s1404_s3 + $0x270] sm:$0xff] }
  0x1f   : > { %412 = vmatpush.msra.mxu0 %v831_v29  ;;  %456 = vmatpush.msra.mxu2 %v340_v35  ;;  %v1194_v55 = vld [vmem:[%s310_s14] sm:$0xff]  ;;  %v888_v57 = vld [vmem:[%s1404_s3 + $0x2f8] sm:$0xff]  ;;  %v887_v61 = vld [vmem:[%s1404_s3 + $0x2f0] sm:$0xff]  ;;  %s319_s14 = scalar_lea.vmem %s1403_s2, %s1152_s24 }
  0x20   : > { %432 = vmatpush.msra.mxu1 %v847_v30  ;;  %476 = vmatpush.msra.mxu3 %v356_v40  ;;  %398 = vst [vmem:[#allocation1] ss:$2 sm:$0xff] %v1194_v55  ;;  %v335_v58 = vld [vmem:[%s1404_s3 + $0x18] sm:$0xff]  ;;  %v352_v59 = vld [vmem:[%s1404_s3 + $0xa0] sm:$0xff]  ;;  %v334_v62 = vld [vmem:[%s1404_s3 + $0x10] sm:$0xff] }
  0x21   : > { %413 = vmatpush.msra.mxu0 %v830_v33  ;;  %457 = vmatpush.msra.mxu2 %v339_v39  ;;  %v351_v63 = vld [vmem:[%s1404_s3 + $0x98] sm:$0xff]  ;;  %v870_v0 = vld [vmem:[%s1404_s3 + $0x268] sm:$0xff]  ;;  %v869_v2 = vld [vmem:[%s1404_s3 + $0x260] sm:$0xff] }
  0x22   : > { %433 = vmatpush.msra.mxu1 %v846_v34  ;;  %477 = vmatpush.msra.mxu3 %v355_v44  ;;  %v886_v1 = vld [vmem:[%s1404_s3 + $0x2e8] sm:$0xff]  ;;  %v350_v4 = vld [vmem:[%s1404_s3 + $0x90] sm:$0xff]  ;;  %v1240_v5 = vld [vmem:[%s301_s26] sm:$0xff] }
  0x23   : > { %414 = vmatpush.msra.mxu0 %v829_v37  ;;  %458 = vmatpush.msra.mxu2 %v338_v43  ;;  %v333_v3 = vld [vmem:[%s1404_s3 + $0x8] sm:$0xff]  ;;  %v885_v6 = vld [vmem:[%s1404_s3 + $0x2e0] sm:$0xff]  ;;  %v868_v11 = vld [vmem:[%s1404_s3 + $0x258] sm:$0xff] }
  0x24   : > { %434 = vmatpush.msra.mxu1 %v845_v38  ;;  %478 = vmatpush.msra.mxu3 %v354_v48  ;;  %v332_v7 = vld [vmem:[%s1404_s3] sm:$0xff]  ;;  %v349_v8 = vld [vmem:[%s1404_s3 + $0x88] sm:$0xff]  ;;  %v884_v12 = vld [vmem:[%s1404_s3 + $0x2d8] sm:$0xff] }
  0x25   : > { %415 = vmatpush.msra.mxu0 %v828_v41  ;;  %459 = vmatpush.msra.mxu2 %v337_v47  ;;  %v348_v13 = vld [vmem:[%s1404_s3 + $0x80] sm:$0xff]  ;;  %v867_v14 = vld [vmem:[%s1404_s3 + $0x250] sm:$0xff]  ;;  %v585_v16 = vld [vmem:[%s1405_s4 + $0x78] sm:$0xff] }
  0x26   : > { %435 = vmatpush.msra.mxu1 %v844_v42  ;;  %479 = vmatpush.msra.mxu3 %v353_v52  ;;  %v883_v15 = vld [vmem:[%s1404_s3 + $0x2d0] sm:$0xff]  ;;  %v866_v17 = vld [vmem:[%s1404_s3 + $0x248] sm:$0xff]  ;;  %v1280_v19 = vld [vmem:[%s319_s14] sm:$0xff] }
  0x27   : > { %416 = vmatpush.msra.mxu0 %v827_v45  ;;  %460 = vmatpush.msra.mxu2 %v336_v51  ;;  %v399_v9 = vld.sshfl [vmem:[#allocation1] sm:$0xff pattern:$0x75316420]  ;;  %v400_v10 = vld.sshfl [vmem:[#allocation1 + $0x8] sm:$0xff pattern:$0x75316420] }
  0x28   : > { %436 = vmatpush.msra.mxu1 %v843_v46  ;;  %480 = vmatpush.msra.mxu3 %v352_v59  ;;  %444 = vst [vmem:[#allocation1] ss:$2 sm:$0xff] %v1240_v5  ;;  %v882_v18 = vld [vmem:[%s1404_s3 + $0x2c8] sm:$0xff]  ;;  %v865_v20 = vld [vmem:[%s1404_s3 + $0x240] sm:$0xff]  ;;  %v584_v22 = vld [vmem:[%s1405_s4 + $0x70] sm:$0xff] }
  0x29   : > { %417 = vmatpush.msra.mxu0 %v826_v49  ;;  %461 = vmatpush.msra.mxu2 %v335_v58  ;;  %v881_v21 = vld [vmem:[%s1404_s3 + $0x2c0] sm:$0xff]  ;;  %v864_v25 = vld [vmem:[%s1404_s3 + $0x238] sm:$0xff]  ;;  %v583_v27 = vld [vmem:[%s1405_s4 + $0x68] sm:$0xff] }
  0x2a   : > { %437 = vmatpush.msra.mxu1 %v842_v50  ;;  %481 = vmatpush.msra.mxu3 %v351_v63  ;;  %v880_v26 = vld [vmem:[%s1404_s3 + $0x2b8] sm:$0xff]  ;;  %v863_v28 = vld [vmem:[%s1404_s3 + $0x230] sm:$0xff]  ;;  %v582_v30 = vld [vmem:[%s1405_s4 + $0x60] sm:$0xff] }
  0x2b   : > { %418 = vmatpush.msra.mxu0 %v825_v53  ;;  %462 = vmatpush.msra.mxu2 %v334_v62  ;;  %v879_v29 = vld [vmem:[%s1404_s3 + $0x2b0] sm:$0xff]  ;;  %v862_v31 = vld [vmem:[%s1404_s3 + $0x228] sm:$0xff]  ;;  %v581_v33 = vld [vmem:[%s1405_s4 + $0x58] sm:$0xff] }
  0x2c   : > { %438 = vmatpush.msra.mxu1 %v841_v54  ;;  %482 = vmatpush.msra.mxu3 %v350_v4  ;;  %v878_v32 = vld [vmem:[%s1404_s3 + $0x2a8] sm:$0xff]  ;;  %v861_v34 = vld [vmem:[%s1404_s3 + $0x220] sm:$0xff]  ;;  %v580_v36 = vld [vmem:[%s1405_s4 + $0x50] sm:$0xff] }
  0x2d   : > { %528 = vmatpush.msrb.mxu0 %v872_v56  ;;  %463 = vmatpush.msra.mxu2 %v333_v3  ;;  %v877_v35 = vld [vmem:[%s1404_s3 + $0x2a0] sm:$0xff]  ;;  %v860_v37 = vld [vmem:[%s1404_s3 + $0x218] sm:$0xff]  ;;  %v579_v39 = vld [vmem:[%s1405_s4 + $0x48] sm:$0xff] }
  0x2e   : > { %548 = vmatpush.msrb.mxu1 %v888_v57  ;;  %483 = vmatpush.msra.mxu3 %v349_v8  ;;  %v876_v38 = vld [vmem:[%s1404_s3 + $0x298] sm:$0xff]  ;;  %v859_v40 = vld [vmem:[%s1404_s3 + $0x210] sm:$0xff]  ;;  %v578_v42 = vld [vmem:[%s1405_s4 + $0x40] sm:$0xff] }
  0x2f   : > { %529 = vmatpush.msrb.mxu0 %v871_v60  ;;  %464 = vmatpush.msra.mxu2 %v332_v7  ;;  %v445_v23 = vld.sshfl [vmem:[#allocation1] sm:$0xff pattern:$0x75316420]  ;;  %v446_v24 = vld.sshfl [vmem:[#allocation1 + $0x8] sm:$0xff pattern:$0x75316420] }
  0x30   : > { %549 = vmatpush.msrb.mxu1 %v887_v61  ;;  %484 = vmatpush.msra.mxu3 %v348_v13  ;;  %523 = vst [vmem:[#allocation1] ss:$2 sm:$0xff] %v1280_v19  ;;  %v875_v41 = vld [vmem:[%s1404_s3 + $0x290] sm:$0xff]  ;;  %v858_v43 = vld [vmem:[%s1404_s3 + $0x208] sm:$0xff]  ;;  %v857_v45 = vld [vmem:[%s1404_s3 + $0x200] sm:$0xff] }
  0x31   : > { %530 = vmatpush.msrb.mxu0 %v870_v0  ;;  %439 = vmatmul.f32.vlgmr.msra.gmra.mxu1 %v400_v10  ;;  %v874_v44 = vld [vmem:[%s1404_s3 + $0x288] sm:$0xff]  ;;  %v873_v46 = vld [vmem:[%s1404_s3 + $0x280] sm:$0xff]  ;;  %v577_v49 = vld [vmem:[%s1405_s4 + $0x38] sm:$0xff] }
  0x32   : > { %550 = vmatpush.msrb.mxu1 %v886_v1  ;;  %419 = vmatmul.f32.vlgmr.msra.gmra.mxu0 %v399_v9  ;;  %v576_v50 = vld [vmem:[%s1405_s4 + $0x30] sm:$0xff]  ;;  %v575_v51 = vld [vmem:[%s1405_s4 + $0x28] sm:$0xff]  ;;  %v574_v52 = vld [vmem:[%s1405_s4 + $0x20] sm:$0xff] }
  0x33   : > { %531 = vmatpush.msrb.mxu0 %v869_v2  ;;  %586 = vmatpush.msrb.mxu2 %v585_v16  ;;  %v573_v53 = vld [vmem:[%s1405_s4 + $0x18] sm:$0xff]  ;;  %v572_v54 = vld [vmem:[%s1405_s4 + $0x10] sm:$0xff]  ;;  %v571_v56 = vld [vmem:[%s1405_s4 + $0x8] sm:$0xff] }
  0x34   : > { %551 = vmatpush.msrb.mxu1 %v885_v6  ;;  %465 = vmatmul.f32.vlgmr.msra.gmra.mxu2 %v445_v23  ;;  %v570_v57 = vld [vmem:[%s1405_s4] sm:$0xff] }
  0x35   : > { %532 = vmatpush.msrb.mxu0 %v868_v11  ;;  %485 = vmatmul.f32.vlgmr.msra.gmra.mxu3 %v446_v24 }
  0x36   : > { %552 = vmatpush.msrb.mxu1 %v884_v12  ;;  %587 = vmatpush.msrb.mxu2 %v584_v22 }
  0x37   : > { %533 = vmatpush.msrb.mxu0 %v867_v14  ;;  %v524_v47 = vld.sshfl [vmem:[#allocation1] sm:$0xff pattern:$0x75316420]  ;;  %v525_v48 = vld.sshfl [vmem:[#allocation1 + $0x8] sm:$0xff pattern:$0x75316420] }
  0x38   : > { %553 = vmatpush.msrb.mxu1 %v883_v15  ;;  %588 = vmatpush.msrb.mxu2 %v583_v27 }
  0x39   : > { %534 = vmatpush.msrb.mxu0 %v866_v17 }
  0x3a   : > { %554 = vmatpush.msrb.mxu1 %v882_v18  ;;  %589 = vmatpush.msrb.mxu2 %v582_v30 }
  0x3b   : > { %535 = vmatpush.msrb.mxu0 %v865_v20 }
  0x3c   : > { %555 = vmatpush.msrb.mxu1 %v881_v21  ;;  %590 = vmatpush.msrb.mxu2 %v581_v33  ;;  %v625_v21 = vlaneseq  ;;  %v964_v33 = vmov 2  }
  0x3d   : > { %536 = vmatpush.msrb.mxu0 %v864_v25 }
  0x3e   : > { %556 = vmatpush.msrb.mxu1 %v880_v26  ;;  %591 = vmatpush.msrb.mxu2 %v580_v36  ;;  %v626_v24 = vand.u32 127, %v625_v21 }
  0x3f   : > { %537 = vmatpush.msrb.mxu0 %v863_v28  ;;  %v962_v28 = vmov 1  }
  0x40   : > { %557 = vmatpush.msrb.mxu1 %v879_v29  ;;  %592 = vmatpush.msrb.mxu2 %v579_v39  ;;  %vm627_vm4 = vcmp.lt.s32.totalorder %v626_v24, 3  ;;  %v963_v29 = vmov 0  }
  0x41   : > { %538 = vmatpush.msrb.mxu0 %v862_v31  ;;  %927 = vset.pattern.permute.xlu1 %v962_v28 }
  0x42   : > { %558 = vmatpush.msrb.mxu1 %v878_v32  ;;  %593 = vmatpush.msrb.mxu2 %v578_v42 }
  0x43   : > { %539 = vmatpush.msrb.mxu0 %v861_v34  ;;  %926 = vset.pattern.permute.xlu0 %v963_v29  ;;  %v965_v34 = vmov 839922192  }
  0x44   : > { %559 = vmatpush.msrb.mxu1 %v877_v35  ;;  %594 = vmatpush.msrb.mxu2 %v577_v49  ;;  %v642_v35 = vunpack.c.l.s4 %v965_v34  ;;  %v675_v49 = vmul.f32 0.9, %v1280_v19 }
  0x45   : > { %540 = vmatpush.msrb.mxu0 %v860_v37 }
  0x46   : > { %560 = vmatpush.msrb.mxu1 %v876_v38  ;;  %595 = vmatpush.msrb.mxu2 %v576_v50  ;;  %v643_v36 = vunpack.c.0.s8 %v642_v35 }
  0x47   : > { %541 = vmatpush.msrb.mxu0 %v859_v40 }
  0x48   : > { %561 = vmatpush.msrb.mxu1 %v875_v41  ;;  %596 = vmatpush.msrb.mxu2 %v575_v51 }
  0x49   : > { %542 = vmatpush.msrb.mxu0 %v858_v43 }
  0x4a   : > { %562 = vmatpush.msrb.mxu1 %v874_v44  ;;  %597 = vmatpush.msrb.mxu2 %v574_v52 }
  0x4b   : > { %543 = vmatpush.msrb.mxu0 %v857_v45 }
  0x4c   : > { %563 = vmatpush.msrb.mxu1 %v873_v46  ;;  %544 = vmatmul.f32.vlgmr.msrb.gmra.mxu0 %v524_v47  ;;  %v667_v47 = vmul.f32 0.9, %v1240_v5 }
  0x4d   : > { %564 = vmatmul.f32.vlgmr.msrb.gmra.mxu1 %v525_v48  ;;  %598 = vmatpush.msrb.mxu2 %v573_v53  ;;  %v671_v48 = vmul.f32 0.9, %v1194_v55 }
  0x4f   : > { %599 = vmatpush.msrb.mxu2 %v572_v54 }
  0x51   : > { %600 = vmatpush.msrb.mxu2 %v571_v56 }
  0x53   : > { %601 = vmatpush.msrb.mxu2 %v570_v57 }
  0xae   : > { %v440_v59 = vpop.f32.mrf.mxu1 }
  0xaf   : > { %v420_v58 = vpop.f32.mrf.mxu0 }
  0xb0   : > { %v441_v60 = vadd.f32 %v440_v59, %v420_v58 }
  0xb7   : > { %v466_v61 = vpop.f32.mrf.mxu2 }
  0xb8   : > { %v467_v62 = vadd.f32 %v466_v61, %v441_v60  ;;  %v486_v63 = vpop.f32.mrf.mxu3 }
  0xba   : > { %v487_v2 = vadd.f32 %v486_v63, %v467_v62 }
  0xc9   : > { %v545_v0 = vpop.f32.mrf.mxu0 }
  0xca   : > { %v565_v1 = vpop.f32.mrf.mxu1 }
  0xcb   : > { %v566_v3 = vadd.f32 %v565_v1, %v545_v0 }
  0xcd   : > { %v568_v4 = vadd.f32 %v566_v3, %v487_v2 }
  0xcf   : > { %v569_v6 = vmax.f32 %v568_v4, 0.0 }
  0xd1   : > { %602 = vmatmul.f32.vlgmr.msrb.gmra.mxu2 %v569_v6 }
 0x154   : > { %v603_v7 = vpop.f32.mrf.mxu2 }
 0x155   : > { %v889_v8 = vmul.f32 -1.442695, %v603_v7 }
 0x157   : > { %930 = vpow2.f32 %v889_v8 }
 0x15d   : > { %v931_v9 = vpop.eup %930 }
 0x15e   : > { %v609_v10 = vadd.f32 1.0, %v931_v9 }
 0x160   : > { %932 = vrcp.f32 %v609_v10  ;;  %v621_v14 = vand.u32 2147483648, %v609_v10  ;;  %v619_v16 = vand.u32 2147483647, %v609_v10  ;;  %vm615_vm1 = vweird.f32 %v609_v10 }
 0x162   : > { %v622_v18 = vor.u32 1.1754944e-38, %v621_v14  ;;  %vm620_vm3 = vcmp.eq.f32.partialorder %v619_v16, 8.507059e+37 }
 0x166   : > { %v933_v11 = vpop.eup %932 }
 0x167   : > { %v611_v12 = vmul.f32 %v933_v11, %v609_v10  ;;  %vm616_vm0 = vweird.f32 %v933_v11 }
 0x168   : > { %vm617_vm2 = vmor %vm615_vm1, %vm616_vm0 }
 0x169   : > { %v612_v13 = vsub.f32 1.0, %v611_v12 }
 0x16b   : > { %v613_v15 = vmul.f32 %v933_v11, %v612_v13 }
 0x16d   : > { %v614_v17 = vadd.f32 %v933_v11, %v613_v15 }
 0x16f   : > { %v618_v20 = vsel %vm617_vm2, %v933_v11, %v614_v17 }
 0x170   : > { %v623_v22 = vsel %vm620_vm3, %v622_v18, %v618_v20 }
 0x171   : > { %v628_v23 = vmul.f32 1.442695, %v623_v22 }
 0x173   : > { %934 = vpow2.f32 %v628_v23 }
 0x179   : > { %v935_v25 = vpop.eup %934 }
 0x17a   : > { %v630_v26 = vsel %vm627_vm4, %v935_v25, 0.0 }
 0x17b   : > { %v632_v27 = vsel %vm631_vm5, %v630_v26, 0.0 }
 0x17c   : > { %633 = vadd.xlane.f32.xlu0 %v632_v27 }
 0x1ef   : > { %v634_v30 = vpop.xlane.xlu0 %633 }
 0x1f0   : > { %936 = vrcp.f32 %v634_v30 }
 0x1f6   : > { %v937_v31 = vpop.eup %936 }
 0x1f7   : > { %v636_v32 = vmul.f32 %v937_v31, %v630_v26 }
 0x1f9   : > { %648 = vperm.xlu1 %927, %v636_v32   ;;  %639 = vperm.xlu0 %926, %v636_v32  }
 0x201   : > { %928 = vset.pattern.permute.xlu1 %v964_v33  ;;  %929 = vset.pattern.permute.xlu0 %v964_v33 }
 0x202   : > { %658 = vperm.xlu1 %928, %v636_v32  }
 0x26b   : > { %v649_v37 = vpop.permute.xlu1 %648  ;;  %v640_v38 = vpop.permute.xlu0 %639 }
 0x26c   : > { %v653_v39 = vperm.slane %v649_v37, %v643_v36  ;;  %v644_v40 = vperm.slane %v640_v38, %v643_v36 }
 0x26e   : > { %v655_v41 = vmul.f32 %v653_v39, %v1194_v55  ;;  %v646_v42 = vmul.f32 %v644_v40, %v1240_v5 }
 0x270   : > { %v656_v45 = vadd.f32 %v655_v41, %v646_v42 }
 0x274   : > { %v659_v43 = vpop.permute.xlu1 %658 }
 0x275   : > { %v663_v44 = vperm.slane %v659_v43, %v643_v36 }
 0x277   : > { %v665_v46 = vmul.f32 %v663_v44, %v1280_v19 }
 0x279   : > { %v666_v50 = vadd.f32 %v665_v46, %v656_v45 }
 0x27b   : > { %v668_v51 = vmul.f32 0.1, %v666_v50 }
 0x27d   : > { %v669_v52 = vadd.f32 %v668_v51, %v667_v47  ;;  %v672_v53 = vadd.f32 %v671_v48, %v668_v51  ;;  %v676_v54 = vadd.f32 %v675_v49, %v668_v51 }
 0x27f   : > { %670 = vst [vmem:[%s328_s6] sm:$0xff] %v669_v52 }
 0x280   : > { %890 = vst [vmem:[%s328_s6 + $0x8] sm:$0xff] %v672_v53 }
 0x281   : > { %891 = vst [vmem:[%s328_s6 + $0x10] sm:$0xff] %v676_v54 }
 0x282 PF: > { %s15_s20 = sadd.s32 1, %s960_s20   ;;  %s1407_s18 = smov %s956_s19 }
 0x283   : > { %p12_p5 = scmp.ge.s32.totalorder %s15_s20, 4   ;;  %s1408_s19 = smov %s1410_s21 }
 0x285   :  { %14 = sbr.rel (!%p12_p5) target bundleno = 2 (0x2), region = 80 }

</bundles_post_ra>
